<compile_context>
chip_gen: v5e
topology: v5e:2x2
jax: 0.10.0
libtpu: 0.0.40
codegen_flags: <defaults>
</compile_context>

<pallas_src>
import functools
import math

import jax
import jax.numpy as jnp
import numpy as np
from jax.experimental import pallas as pl
from jax.experimental.pallas import tpu as pltpu

# Module-level constants from llava/model/l0_module.py
LIMIT_A = -0.1
LIMIT_B = 1.1
EPSILON = 1e-6

TEMPERATURE = 2.0 / 3.0
MAGICAL_NUMBER = 0.8
DROPRATE_INIT = 0.5

_SIGMOID_SCALE = MAGICAL_NUMBER / TEMPERATURE   # z / temperature * magical_number
_HALF_OVER_T = 0.5 / TEMPERATURE                # 0.75: sigmoid(x/T)=0.5*(tanh(x/(2T))+1)


# ----------------------------------------------------------------------------
# Kernels (purely element-wise; O(rows * mask_size_padded))
# ----------------------------------------------------------------------------
def _deterministic_z_kernel(z_ref, diff_ref, o_ref):
    """soft = sigmoid(z * magical/temperature); zero every element whose
    ascending per-row rank is below num_zeros (diff = rank - num_zeros < 0),
    matching torch.topk(largest=False) index semantics."""
    soft = jax.nn.sigmoid(z_ref[...] * _SIGMOID_SCALE)
    o_ref[...] = jnp.where(diff_ref[...] < 0, 0.0, soft).astype(o_ref.dtype)


def _sample_z_kernel(z_ref, eps_ref, o_ref):
    """quantile_concrete(eps) followed by hardtanh(., 0, 1).
    sigmoid((logit+z)/T) rewritten as 0.5*(tanh(0.75*(logit+z))+1) and the
    logit as a single log of a ratio -> ~2 EUP ops per element."""
    eps = eps_ref[...]
    logit = jnp.log(eps / (1.0 - eps))
    y = 0.5 * (jnp.tanh(_HALF_OVER_T * (logit + z_ref[...])) + 1.0)
    s = y * (LIMIT_B - LIMIT_A) + LIMIT_A
    o_ref[...] = jnp.clip(s, 0.0, 1.0).astype(o_ref.dtype)


# ----------------------------------------------------------------------------
# pallas_call wrappers (gridless, whole lane-dense slab in VMEM)
# ----------------------------------------------------------------------------
_VMEM = pl.BlockSpec(memory_space=pltpu.MemorySpace.VMEM)


def _det_call(z2, diff2, out_dtype):
    return pl.pallas_call(
        _deterministic_z_kernel,
        out_shape=jax.ShapeDtypeStruct(z2.shape, out_dtype),
        in_specs=[_VMEM, _VMEM],
        out_specs=_VMEM,
    )(z2, diff2)


def _sample_call(z2, eps2, out_dtype):
    return pl.pallas_call(
        _sample_z_kernel,
        out_shape=jax.ShapeDtypeStruct(z2.shape, out_dtype),
        in_specs=[_VMEM, _VMEM],
        out_specs=_VMEM,
    )(z2, eps2)


# ----------------------------------------------------------------------------
# Layout helpers
# ----------------------------------------------------------------------------
def _round_up_128(n):
    return ((n + 127) // 128) * 128


def _pad_last(x, m_pad, value):
    m = x.shape[-1]
    if m == m_pad:
        return x
    return jnp.pad(x, ((0, 0), (0, m_pad - m)), constant_values=value)


# ----------------------------------------------------------------------------
# Forward implementations (device-side, jittable)
# ----------------------------------------------------------------------------
def _cdf_qz(z_loga):
    xn = (0 - LIMIT_A) / (LIMIT_B - LIMIT_A)
    logits = math.log(xn) - math.log(1 - xn)
    return jnp.clip(jax.nn.sigmoid(logits * TEMPERATURE - z_loga),
                    EPSILON, 1 - EPSILON)


def _deterministic_forward(z_loga, *, mask_output_shape, target_num_zeros,
                           out_dtype):
    z2d = z_loga.reshape(-1, z_loga.shape[-1]).astype(jnp.float32)
    r, m = z2d.shape
    if target_num_zeros is None:
        # Per-row expected number of zeros, entirely on device (no host sync,
        # no per-value recompiles) — matches the torch per-row loop.
        expected_score = 1.0 - _cdf_qz(z2d)
        nz = jnp.round(m - jnp.sum(expected_score, axis=-1, keepdims=True))
        nz = nz.astype(jnp.int32)
    else:
        nz = jnp.full((r, 1), int(target_num_zeros), jnp.int32)
    nz = jnp.clip(nz, 0, m)

    # TODO(synk): top-k / sort has no clean Pallas TPU equivalent; the per-row
    # ascending rank (stable, lowest-index tie-break) is computed with one XLA
    # argsort + an inverse-permutation scatter on this tiny array; only the
    # element-wise math runs in the kernel.
    order = jnp.argsort(z2d, axis=-1)                              # stable asc
    iota = jnp.broadcast_to(jnp.arange(m, dtype=jnp.int32), (r, m))
    rows = jnp.arange(r, dtype=jnp.int32)[:, None]
    rank = jnp.zeros((r, m), jnp.int32).at[rows, order].set(iota)
    diff = rank - nz                                               # <0 => kill

    m_pad = _round_up_128(m)
    out = _det_call(_pad_last(z2d, m_pad, 0.0),
                    _pad_last(diff, m_pad, 0),
                    out_dtype)
    if m_pad != m:
        out = out[:, :m]
    return out.reshape(mask_output_shape)


def _sample_forward(z_loga, key, *, mask_output_shape, out_dtype):
    z2d = z_loga.reshape(-1, z_loga.shape[-1]).astype(jnp.float32)
    r, m = z2d.shape
    # TODO(synk): torch draws eps with torch CPU RNG (uniform_(eps, 1-eps));
    # the random stream differs, the Uniform(EPSILON, 1-EPSILON) distribution
    # matches.  Drawn with jax.random (not the in-kernel TPU hardware PRNG)
    # so the kernel also lowers under interpret mode.
    eps = jax.random.uniform(key, (r, m), jnp.float32,
                             minval=EPSILON, maxval=1.0 - EPSILON)
    m_pad = _round_up_128(m)
    out = _sample_call(_pad_last(z2d, m_pad, 0.0),
                       _pad_last(eps, m_pad, 0.5),
                       out_dtype)
    if m_pad != m:
        out = out[:, :m]
    return out.reshape(mask_output_shape)


# ----------------------------------------------------------------------------
# Module port
# ----------------------------------------------------------------------------
class MaskPallas:
    """JAX/Pallas port of llava.model.l0_module.Mask (forward pass only)."""

    # TODO(synk): when the surrounding L0Module owns several Mask instances
    # (head / intermediate / hidden / layer), concatenate their flattened
    # lane-dense slabs and run ONE pallas_call per mode to amortize launch +
    # DMA ramp overhead; each mask alone is only a few hundred KB.

    def __init__(self, name, mask_shape, num_params_per_mask, mask_output_shape,
                 target_sparsity, target_mask_size, eval_target_model=True,
                 key=None, out_dtype=jnp.float32):
        self.name = name
        self.num_params_per_mask = num_params_per_mask
        self.mask_output_shape = tuple(mask_output_shape)
        self.target_sparsity = target_sparsity
        self.droprate_init = DROPRATE_INIT
        self.temperature = TEMPERATURE
        self.magical_number = MAGICAL_NUMBER
        key = jax.random.PRNGKey(0) if key is None else key
        # param_init_fn: normal(mean=5, std=0.01) (mean hard-coded to 5)
        self.z_loga = 5.0 + 0.01 * jax.random.normal(
            key, tuple(mask_shape), jnp.float32)
        self.mask_size = self.z_loga.shape[-1]
        self.target_mask_size = target_mask_size
        self.eval_target_model = eval_target_model
        self.training = False   # mirrors nn.Module.training switch

        if target_mask_size is None or not eval_target_model:
            tgt_nz = None       # data-dependent per-row count, computed on device
        else:
            tgt_nz = int(self.mask_size - target_mask_size)
        self._det_fn = jax.jit(functools.partial(
            _deterministic_forward,
            mask_output_shape=self.mask_output_shape,
            target_num_zeros=tgt_nz,
            out_dtype=out_dtype))
        self._sample_fn = jax.jit(functools.partial(
            _sample_forward,
            mask_output_shape=self.mask_output_shape,
            out_dtype=out_dtype))

    # --- torch-parity helpers -------------------------------------------------
    def cdf_qz(self, z_loga=None):
        return _cdf_qz(self.z_loga if z_loga is None else z_loga)

    def calculate_expected_score_sparsity(self):
        score = 1 - self.cdf_qz()
        sparsity = 1 - jnp.sum(score, axis=-1) / self.mask_size
        return score, sparsity

    def constrain_parameters(self):
        self.z_loga = jnp.clip(self.z_loga, math.log(0.01), math.log(100.0))

    # --- forward branches -----------------------------------------------------
    def deterministic_z(self):
        return self._det_fn(self.z_loga)

    def sample_z(self, key):
        return self._sample_fn(self.z_loga, key)

    def forward(self, key=None):
        if self.training:
            key = jax.random.PRNGKey(0) if key is None else key
            return self.sample_z(key)
        return self.deterministic_z()


# ----------------------------------------------------------------------------
# Pure-JAX references (correctness check)
# ----------------------------------------------------------------------------
def _reference_deterministic_rows(z2d, num_zeros_per_row):
    soft = jax.nn.sigmoid(z2d * (MAGICAL_NUMBER / TEMPERATURE))
    rows = []
    for i in range(z2d.shape[0]):
        k = int(num_zeros_per_row[i])
        k = min(max(k, 0), z2d.shape[1])
        row = soft[i]
        if k > 0:
            idx = jnp.argsort(z2d[i])[:k]     # stable, smallest first
            row = row.at[idx].set(0.0)
        rows.append(row)
    return jnp.stack(rows)


def _reference_sample(z2d, key):
    eps = jax.random.uniform(key, z2d.shape, jnp.float32,
                             minval=EPSILON, maxval=1.0 - EPSILON)
    y = jax.nn.sigmoid((jnp.log(eps) - jnp.log(1.0 - eps) + z2d) / TEMPERATURE)
    return jnp.clip(y * (LIMIT_B - LIMIT_A) + LIMIT_A, 0.0, 1.0)


if __name__ == "__main__":
    root = jax.random.PRNGKey(0)
    k_init, k_init2, k_eps = jax.random.split(root, 3)

    mask_shape = [4, 32]               # e.g. [num_layers, num_attention_heads]
    mask_output_shape = [4, 1, 32, 1]  # head-mask output layout
    target_mask_size = 24              # keep 24 / 32 heads -> 8 zeros per row

    m = MaskPallas(
        name="head",
        mask_shape=mask_shape,
        num_params_per_mask=3072,
        mask_output_shape=mask_output_shape,
        target_sparsity=0.25,
        target_mask_size=target_mask_size,
        eval_target_model=True,
        key=k_init,
    )

    # eval-mode forward (deterministic_z), target_mask_size branch
    m.training = False
    z_eval = jax.block_until_ready(m.forward())
    assert z_eval.shape == tuple(mask_output_shape)

    z2d = m.z_loga.reshape(-1, m.z_loga.shape[-1])
    ref = _reference_deterministic_rows(
        z2d, [m.mask_size - target_mask_size] * z2d.shape[0])
    np.testing.assert_allclose(np.asarray(z_eval).reshape(ref.shape),
                               np.asarray(ref), rtol=1e-6, atol=1e-6)

    # eval-mode forward, data-dependent (non-target) branch: per-row num_zeros
    # computed on device, no recompilation / host sync.
    m2 = MaskPallas(
        name="head_no_target",
        mask_shape=mask_shape,
        num_params_per_mask=3072,
        mask_output_shape=mask_output_shape,
        target_sparsity=0.25,
        target_mask_size=None,
        eval_target_model=False,
        key=k_init2,
    )
    z_eval2 = jax.block_until_ready(m2.forward())
    z2d2 = m2.z_loga.reshape(-1, m2.z_loga.shape[-1])
    exp_score = 1.0 - _cdf_qz(z2d2)
    nz_rows = [int(round(float(z2d2.shape[1] - jnp.sum(exp_score[i]))))
               for i in range(z2d2.shape[0])]
    ref2 = _reference_deterministic_rows(z2d2, nz_rows)
    np.testing.assert_allclose(np.asarray(z_eval2).reshape(ref2.shape),
                               np.asarray(ref2), rtol=1e-6, atol=1e-6)

    # training-mode forward (sample_z): same jax.random stream as the reference
    m.training = True
    z_train = jax.block_until_ready(m.forward(key=k_eps))
    assert z_train.shape == tuple(mask_output_shape)
    z_train2d = np.asarray(z_train).reshape(z2d.shape)
    assert float(z_train2d.min()) >= 0.0 and float(z_train2d.max()) <= 1.0
    ref3 = _reference_sample(z2d, k_eps)
    np.testing.assert_allclose(z_train2d, np.asarray(ref3),
                               rtol=1e-5, atol=2e-5)

    print("KERNEL_OK")
</pallas_src>

<mosaic_0001>
module attributes {stable_mosaic.version = 11 : i64} {
  func.func @_deterministic_z_kernel(%arg0: memref<4x128xf32, #tpu.memory_space<vmem>>, %arg1: memref<4x128xi32, #tpu.memory_space<vmem>>, %arg2: memref<4x128xf32, #tpu.memory_space<vmem>>) attributes {dimension_semantics = [], scalar_prefetch = 0 : i64, scratch_operands = 0 : i64, tpu.core_type = #tpu.core_type<tc>} {
    %c0 = arith.constant 0 : index
    %c0_0 = arith.constant 0 : index
    %0 = vector.load %arg0[%c0, %c0_0] : memref<4x128xf32, #tpu.memory_space<vmem>>, vector<4x128xf32>
    %cst = arith.constant 1.200000e+00 : f32
    %1 = vector.broadcast %cst : f32 to vector<4x128xf32>
    %2 = arith.mulf %0, %1 : vector<4x128xf32>
    %3 = arith.negf %2 : vector<4x128xf32>
    %4 = math.exp %3 : vector<4x128xf32>
    %cst_1 = arith.constant 1.000000e+00 : f32
    %5 = vector.broadcast %cst_1 : f32 to vector<4x128xf32>
    %6 = arith.addf %5, %4 : vector<4x128xf32>
    %7 = arith.divf %5, %6 : vector<4x128xf32>
    %c0_2 = arith.constant 0 : index
    %c0_3 = arith.constant 0 : index
    %8 = vector.load %arg1[%c0_2, %c0_3] : memref<4x128xi32, #tpu.memory_space<vmem>>, vector<4x128xi32>
    %c0_i32 = arith.constant 0 : i32
    %9 = vector.broadcast %c0_i32 : i32 to vector<4x128xi32>
    %10 = arith.cmpi slt, %8, %9 : vector<4x128xi32>
    %cst_4 = arith.constant 0.000000e+00 : f32
    %11 = vector.broadcast %cst_4 : f32 to vector<4x128xf32>
    %12 = arith.select %10, %11, %7 : vector<4x128xi1>, vector<4x128xf32>
    %c0_5 = arith.constant 0 : index
    %c0_6 = arith.constant 0 : index
    %13 = vector.load %arg2[%c0_5, %c0_6] : memref<4x128xf32, #tpu.memory_space<vmem>>, vector<4x128xf32>
    tpu.vector_store %arg2[%c0_5, %c0_6], %12 {strides = array<i32>} : memref<4x128xf32, #tpu.memory_space<vmem>>, vector<4x128xf32>,
    return
  }
}

</mosaic_0001>

<bundles_post_ra>
// kernel: _deterministic_forward.1
= control target key start
LH: loop header
LB: loop body
LE: loop exit
PB: predicated region body
PF: predicated region fallthrough
CT: control target
= control target key end

     0   :  { %s110_s0 = inlined_call_operand.vmem [shape: f32[4,128], index: 0, kind: input, shape index: {}]   ;;  %s111_s1 = inlined_call_operand.vmem [shape: s32[4,128], index: 1, kind: input, shape index: {}]   ;;  %s112_s2 = inlined_call_operand.hbm [shape: f32[4,128], index: 2, kind: output, shape index: {}]  }
   0x1   :  { %v12_v0 = vld [vmem:[%s110_s0] sm:$0xf] }
   0x2   :  { %7 = vsyncpa [#allocation3], 0  ;;  %v53_v1 = vmul.f32 -1.2, %v12_v0  ;;  %v33_v11 = vld [vmem:[%s111_s1] sm:$0xf] }
   0x3   :  { %s85_s0 = smov [#allocation2]   ;;  %s44_s16 = sshll.u32 %s112_s2, 4  ;;  %vm34_vm4 = vcmp.lt.s32.totalorder %v33_v11, 0  ;;  %s45_s16 = int_to_ptr.hbm [resolvable:$true] %s44_s16 }
   0x4   :  { %v15_v2 = vmul.f32 1.442695, %v53_v1  ;;  %s42_s13 = sshll.u32 %s85_s0, 4  ;;  %s43_s13 = int_to_ptr.vmem [resolvable:$true] %s42_s13 }
   0x6   :  { %55 = vpow2.f32 %v15_v2 }
   0xc   :  { %v56_v3 = vpop.eup %55 }
   0xd   :  { %v17_v4 = vadd.f32 1.0, %v56_v3 }
   0xf   :  { %57 = vrcp.f32 %v17_v4  ;;  %v29_v7 = vand.u32 2147483648, %v17_v4  ;;  %vm23_vm0 = vweird.f32 %v17_v4  ;;  %v27_v9 = vand.u32 2147483647, %v17_v4 }
  0x11   :  { %v30_v12 = vor.u32 1.1754944e-38, %v29_v7  ;;  %vm28_vm3 = vcmp.eq.f32.partialorder %v27_v9, 8.507059e+37 }
  0x15   :  { %v58_v5 = vpop.eup %57 }
  0x16   :  { %v19_v6 = vmul.f32 %v58_v5, %v17_v4  ;;  %vm24_vm1 = vweird.f32 %v58_v5 }
  0x17   :  { %vm25_vm2 = vmor %vm23_vm0, %vm24_vm1 }
  0x18   :  { %v20_v8 = vsub.f32 1.0, %v19_v6 }
  0x1a   :  { %v21_v10 = vmul.f32 %v58_v5, %v20_v8 }
  0x1c   :  { %v22_v13 = vadd.f32 %v58_v5, %v21_v10 }
  0x1e   :  { %v26_v14 = vsel %vm25_vm2, %v58_v5, %v22_v13 }
  0x1f   :  { %v31_v15 = vsel %vm28_vm3, %v30_v12, %v26_v14 }
  0x20   :  { %v35_v16 = vsel %vm34_vm4, 0.0, %v31_v15 }
  0x21   :  { %36 = vst [vmem:[#allocation2] sm:$0xf] %v35_v16 }
  0x22   :  { %47 = dma.vmem_to_hbm [thread:$0]  %s43_s13, 64, %s45_s16, [#allocation3]  }
  0x23   :  { %83 = dma.done.wait [#allocation3], 64  }
  0x24   :  { %84 = vsyncadd [#allocation3], 4294967232 }
  0x25   :  { %52 = vsyncpa [#allocation3], 1 }

</bundles_post_ra>
